<compile_context>
chip_gen: v6e
topology: v6e:2x2x1
jax: 0.10.0
libtpu: 0.0.40
codegen_flags: <defaults>
</compile_context>

<pallas_src>
import functools

import jax
import jax.numpy as jnp
from jax.experimental import pallas as pl
from jax.experimental.pallas import tpu as pltpu

IN_DIM = 28 * 28   # 784
HID_DIM = 128
OUT_DIM = 10
OUT_PAD = 128      # lane-dense width for the fc2 / softmax / output tile
NEG_BIG = -1e30    # padding "bias" so exp(padded logit) == 0 in the logsumexp


def _round_up(n, m):
    return ((n + m - 1) // m) * m


def _vmem_limit_bytes():
    """~3/4 of physical VMEM (48 MiB on v7x, 96 MiB on v5e/v6e)."""
    cap = 64 << 20  # conservative fallback (safe on every generation)
    try:
        info = pltpu.get_tpu_info()
        cap = int(getattr(info, "vmem_capacity_bytes", cap))
    except Exception:
        pass
    return min(cap * 3 // 4, 100 << 20)


def fc_kernel(x_ref, w1_ref, b1_ref, w2_ref, b2_ref, o_ref):
    # Cast x to bf16 in-kernel (single f32 HBM read; cast hides under the DMA).
    xb = x_ref[...].astype(jnp.bfloat16)

    # fc1: bf16 x bf16 on the MXU, f32 accumulation; bias + ReLU on the VPU.
    h = jnp.dot(xb, w1_ref[...], preferred_element_type=jnp.float32)
    h = jnp.maximum(h + b1_ref[...], 0.0)

    # fc2 in bf16 on the lane-dense 128-wide padded tile, f32 accumulation.
    # Padded W2 columns are zero and padded bias entries are NEG_BIG, so the
    # padded logits contribute nothing to the logsumexp.
    z = jnp.dot(h.astype(jnp.bfloat16), w2_ref[...],
                preferred_element_type=jnp.float32) + b2_ref[...]

    # Numerically stable log_softmax over the class axis (dim=1).
    m = jnp.max(z, axis=1, keepdims=True)
    shifted = z - m
    lse = jnp.log(jnp.sum(jnp.exp(shifted), axis=1, keepdims=True))
    o_ref[...] = (shifted - lse).astype(o_ref.dtype)


@functools.partial(jax.jit, static_argnames=("tb",))
def fc_forward(x, w1, b1, w2, b2, *, tb=2048):
    """x: (B, 784) f32; w1: (784, 128); b1: (128,); w2: (128, 10); b2: (10,)."""
    B = x.shape[0]

    # Batch tile: multiple of 8 sublanes (TB=2048 default is also a multiple of
    # 16 for bf16 in-register packing). Ragged last block handled by Pallas.
    TB = min(tb, _round_up(B, 8))
    # Keep >= 2 grid steps for larger batches so the "parallel" batch axis can
    # be split across the 2 TensorCores on v7x (no-op on 1-TC chips).
    if B > 256 and pl.cdiv(B, TB) < 2:
        TB = _round_up(pl.cdiv(B, 2), 8)
    grid = (pl.cdiv(B, TB),)

    # Resident (small) parameters.
    w1b = w1.astype(jnp.bfloat16)
    b1r = b1.reshape(1, HID_DIM).astype(jnp.float32)
    w2p = jnp.zeros((HID_DIM, OUT_PAD), jnp.bfloat16).at[:, :OUT_DIM].set(
        w2.astype(jnp.bfloat16))
    b2p = jnp.full((1, OUT_PAD), NEG_BIG, jnp.float32).at[0, :OUT_DIM].set(
        b2.astype(jnp.float32))

    out = pl.pallas_call(
        fc_kernel,
        out_shape=jax.ShapeDtypeStruct((B, OUT_PAD), jnp.float32),
        grid=grid,
        in_specs=[
            pl.BlockSpec((TB, IN_DIM), lambda i: (i, 0)),        # x: tiled over batch
            pl.BlockSpec((IN_DIM, HID_DIM), lambda i: (0, 0)),   # W1: resident
            pl.BlockSpec((1, HID_DIM), lambda i: (0, 0)),        # b1: resident
            pl.BlockSpec((HID_DIM, OUT_PAD), lambda i: (0, 0)),  # W2 (padded): resident
            pl.BlockSpec((1, OUT_PAD), lambda i: (0, 0)),        # b2 (padded): resident
        ],
        out_specs=pl.BlockSpec((TB, OUT_PAD), lambda i: (i, 0)),
        compiler_params=pltpu.CompilerParams(
            dimension_semantics=("parallel",),     # shard batch tiles across TCs
            vmem_limit_bytes=_vmem_limit_bytes(),  # 48 MiB v7x / 96 MiB v5e,v6e
        ),
    )(x, w1b, b1r, w2p, b2p)

    # Drop the 118 padded class columns (kept f32 for downstream accuracy).
    # TODO(synk): optionally emit bf16 log-probs / return the padded (B, 128)
    # tensor if the consumer (e.g. NLL gather) tolerates it.
    return out[:, :OUT_DIM]


if __name__ == "__main__":
    key = jax.random.PRNGKey(0)
    kx, kw1, kb1, kw2, kb2 = jax.random.split(key, 5)

    B = 8  # small batch
    x = jax.random.normal(kx, (B, IN_DIM), dtype=jnp.float32)

    # Deterministic synthetic parameters (PyTorch Linear is (out, in); we store
    # the transposed (in, out) layout the kernel expects).
    w1 = jax.random.normal(kw1, (IN_DIM, HID_DIM), dtype=jnp.float32) * 0.05
    b1 = jax.random.normal(kb1, (HID_DIM,), dtype=jnp.float32) * 0.05
    w2 = jax.random.normal(kw2, (HID_DIM, OUT_DIM), dtype=jnp.float32) * 0.05
    b2 = jax.random.normal(kb2, (OUT_DIM,), dtype=jnp.float32) * 0.05

    out = fc_forward(x, w1, b1, w2, b2)
    jax.block_until_ready(out)

    # Sanity checks against pure-JAX references.
    # (a) same bf16-matmul math as the kernel -> tight tolerance
    hb = jnp.maximum(
        jnp.dot(x.astype(jnp.bfloat16), w1.astype(jnp.bfloat16),
                preferred_element_type=jnp.float32) + b1, 0.0)
    zb = jnp.dot(hb.astype(jnp.bfloat16), w2.astype(jnp.bfloat16),
                 preferred_element_type=jnp.float32) + b2
    ref_bf16 = jax.nn.log_softmax(zb, axis=1)
    # (b) full-f32 reference (PyTorch semantics) -> loose tolerance (bf16 matmuls)
    h32 = jnp.maximum(x @ w1 + b1, 0.0)
    ref_f32 = jax.nn.log_softmax(h32 @ w2 + b2, axis=1)

    assert out.shape == (B, OUT_DIM)
    assert jnp.allclose(out, ref_bf16, atol=1e-4, rtol=1e-4)
    assert jnp.allclose(out, ref_f32, atol=3e-2, rtol=1e-3)

    print("KERNEL_OK")
</pallas_src>

<mosaic_0001>
module attributes {stable_mosaic.version = 11 : i64} {
  func.func @fc_kernel(%arg0: i32, %arg1: memref<8x784xf32, #tpu.memory_space<vmem>>, %arg2: memref<784x128xbf16, #tpu.memory_space<vmem>>, %arg3: memref<1x128xf32, #tpu.memory_space<vmem>>, %arg4: memref<128x128xbf16, #tpu.memory_space<vmem>>, %arg5: memref<1x128xf32, #tpu.memory_space<vmem>>, %arg6: memref<8x128xf32, #tpu.memory_space<vmem>>) attributes {dimension_semantics = [#tpu.dimension_semantics<parallel>], iteration_bounds = array<i64: 1>, scalar_prefetch = 0 : i64, scratch_operands = 0 : i64, tpu.core_type = #tpu.core_type<tc>, window_params = [{transform_indices = @transform_0, window_bounds = array<i64: 8, 784>}, {pipeline_mode = #tpu.pipeline_mode<synchronous>, transform_indices = @transform_1, window_bounds = array<i64: 784, 128>}, {pipeline_mode = #tpu.pipeline_mode<synchronous>, transform_indices = @transform_2, window_bounds = array<i64: 1, 128>}, {pipeline_mode = #tpu.pipeline_mode<synchronous>, transform_indices = @transform_3, window_bounds = array<i64: 128, 128>}, {pipeline_mode = #tpu.pipeline_mode<synchronous>, transform_indices = @transform_4, window_bounds = array<i64: 1, 128>}, {transform_indices = @transform_5, window_bounds = array<i64: 8, 128>}]} {
    %c0 = arith.constant 0 : index
    %c0_0 = arith.constant 0 : index
    %0 = vector.load %arg1[%c0, %c0_0] : memref<8x784xf32, #tpu.memory_space<vmem>>, vector<8x784xf32>
    %1 = arith.truncf %0 : vector<8x784xf32> to vector<8x784xbf16>
    %c0_1 = arith.constant 0 : index
    %c0_2 = arith.constant 0 : index
    %2 = vector.load %arg2[%c0_1, %c0_2] : memref<784x128xbf16, #tpu.memory_space<vmem>>, vector<784x128xbf16>
    %cst = arith.constant dense<0.000000e+00> : vector<8x128xf32>
    %3 = tpu.matmul %1, %2, %cst {dimension_numbers = #tpu.dot_dimension_numbers<[1], [0], [0], [1], [0, 0, 1, 1], [], []>} : vector<8x784xbf16>, vector<784x128xbf16>, vector<8x128xf32> -> vector<8x128xf32>
    %c0_3 = arith.constant 0 : index
    %c0_4 = arith.constant 0 : index
    %4 = vector.load %arg3[%c0_3, %c0_4] : memref<1x128xf32, #tpu.memory_space<vmem>>, vector<1x128xf32>
    %5 = vector.broadcast %4 : vector<1x128xf32> to vector<8x128xf32>
    %6 = arith.addf %3, %5 : vector<8x128xf32>
    %cst_5 = arith.constant 0.000000e+00 : f32
    %7 = vector.broadcast %cst_5 : f32 to vector<8x128xf32>
    %8 = arith.maximumf %6, %7 : vector<8x128xf32>
    %9 = arith.truncf %8 : vector<8x128xf32> to vector<8x128xbf16>
    %c0_6 = arith.constant 0 : index
    %c0_7 = arith.constant 0 : index
    %10 = vector.load %arg4[%c0_6, %c0_7] : memref<128x128xbf16, #tpu.memory_space<vmem>>, vector<128x128xbf16>
    %cst_8 = arith.constant dense<0.000000e+00> : vector<8x128xf32>
    %11 = tpu.matmul %9, %10, %cst_8 {dimension_numbers = #tpu.dot_dimension_numbers<[1], [0], [0], [1], [0, 0, 1, 1], [], []>} : vector<8x128xbf16>, vector<128x128xbf16>, vector<8x128xf32> -> vector<8x128xf32>
    %c0_9 = arith.constant 0 : index
    %c0_10 = arith.constant 0 : index
    %12 = vector.load %arg5[%c0_9, %c0_10] : memref<1x128xf32, #tpu.memory_space<vmem>>, vector<1x128xf32>
    %13 = vector.broadcast %12 : vector<1x128xf32> to vector<8x128xf32>
    %14 = arith.addf %11, %13 : vector<8x128xf32>
    %cst_11 = arith.constant dense<0xFF800000> : vector<8xf32>
    %15 = vector.multi_reduction <maximumf>, %14, %cst_11 [1] : vector<8x128xf32> to vector<8xf32>
    %16 = vector.shape_cast %15 : vector<8xf32> to vector<8x1xf32>
    %17 = vector.broadcast %16 : vector<8x1xf32> to vector<8x128xf32>
    %18 = arith.subf %14, %17 : vector<8x128xf32>
    %19 = math.exp %18 : vector<8x128xf32>
    %cst_12 = arith.constant dense<0.000000e+00> : vector<8xf32>
    %20 = vector.multi_reduction <add>, %19, %cst_12 [1] : vector<8x128xf32> to vector<8xf32>
    %21 = vector.shape_cast %20 : vector<8xf32> to vector<8x1xf32>
    %22 = math.log %21 : vector<8x1xf32>
    %23 = vector.broadcast %22 : vector<8x1xf32> to vector<8x128xf32>
    %24 = arith.subf %18, %23 : vector<8x128xf32>
    %c0_13 = arith.constant 0 : index
    %c0_14 = arith.constant 0 : index
    %25 = vector.load %arg6[%c0_13, %c0_14] : memref<8x128xf32, #tpu.memory_space<vmem>>, vector<8x128xf32>
    tpu.vector_store %arg6[%c0_13, %c0_14], %24 {strides = array<i32>} : memref<8x128xf32, #tpu.memory_space<vmem>>, vector<8x128xf32>,
    return
  }
  func.func @transform_0(%arg0: i32) -> (i32, i32) {
    %c0_i32 = arith.constant 0 : i32
    %c0_i32_0 = arith.constant 0 : i32
    return %arg0, %c0_i32 : i32, i32
  }
  func.func @transform_1(%arg0: i32) -> (i32, i32) {
    %c0_i32 = arith.constant 0 : i32
    %c0_i32_0 = arith.constant 0 : i32
    %c0_i32_1 = arith.constant 0 : i32
    return %c0_i32, %c0_i32_0 : i32, i32
  }
  func.func @transform_2(%arg0: i32) -> (i32, i32) {
    %c0_i32 = arith.constant 0 : i32
    %c0_i32_0 = arith.constant 0 : i32
    %c0_i32_1 = arith.constant 0 : i32
    return %c0_i32, %c0_i32_0 : i32, i32
  }
  func.func @transform_3(%arg0: i32) -> (i32, i32) {
    %c0_i32 = arith.constant 0 : i32
    %c0_i32_0 = arith.constant 0 : i32
    %c0_i32_1 = arith.constant 0 : i32
    return %c0_i32, %c0_i32_0 : i32, i32
  }
  func.func @transform_4(%arg0: i32) -> (i32, i32) {
    %c0_i32 = arith.constant 0 : i32
    %c0_i32_0 = arith.constant 0 : i32
    %c0_i32_1 = arith.constant 0 : i32
    return %c0_i32, %c0_i32_0 : i32, i32
  }
  func.func @transform_5(%arg0: i32) -> (i32, i32) {
    %c0_i32 = arith.constant 0 : i32
    %c0_i32_0 = arith.constant 0 : i32
    return %arg0, %c0_i32 : i32, i32
  }
}

</mosaic_0001>

<bundles_post_ra>
// kernel: fc_forward.1
= control target key start
LH: loop header
LB: loop body
LE: loop exit
PB: predicated region body
PF: predicated region fallthrough
CT: control target
= control target key end

     0   :  { %v986_v44 = vmov 0.0   ;;  %vm987_vm0 = vmmov 0   ;;  %vm435_vm1 = vcmask 130048   ;;  %s1233_s0 = inlined_call_operand.vmem [shape: f32[8,784], index: 0, kind: input, shape index: {}]   ;;  %s1234_s1 = inlined_call_operand.vmem [shape: bf16[784,128], index: 1, kind: input, shape index: {}]   ;;  %s1235_s2 = inlined_call_operand.vmem [shape: f32[1,128], index: 2, kind: input, shape index: {}]   ;;  %s1236_s3 = inlined_call_operand.vmem [shape: bf16[128,128], index: 3, kind: input, shape index: {}]   ;;  %s1237_s4 = inlined_call_operand.vmem [shape: f32[1,128], index: 4, kind: input, shape index: {}]   ;;  %s1238_s5 = inlined_call_operand.hbm [shape: f32[8,128], index: 5, kind: output, shape index: {}]  }
   0x1   :  { %v903_v0 = vld [vmem:[%s1234_s1 + $0x78] sm:$0xff]   ;;  %v907_v4 = vld [vmem:[%s1234_s1 + $0x70] sm:$0xff]   ;;  %v911_v8 = vld [vmem:[%s1234_s1 + $0x68] sm:$0xff]  }
   0x2   :  { %v904_v1 = vld [vmem:[%s1234_s1 + $0x38] sm:$0xff]   ;;  %797 = vmatprep.subr.bf16.mxu0 %v903_v0  ;;  %v908_v5 = vld [vmem:[%s1234_s1 + $0x30] sm:$0xff]   ;;  %v912_v9 = vld [vmem:[%s1234_s1 + $0x28] sm:$0xff]  }
   0x3   :  { %v905_v2 = vld [vmem:[%s1234_s1 + $0xf8] sm:$0xff]   ;;  %798 = vmatpush3.bf16.msra.mxu0 %v904_v1  ;;  %v909_v6 = vld [vmem:[%s1234_s1 + $0xf0] sm:$0xff]   ;;  %v913_v10 = vld [vmem:[%s1234_s1 + $0xe8] sm:$0xff]  }
   0x4   :  { %v906_v3 = vld [vmem:[%s1234_s1 + $0xb8] sm:$0xff]   ;;  %819 = vmatprep.subr.bf16.mxu1 %v905_v2  ;;  %799 = vmatprep.subr.bf16.mxu0 %v907_v4  ;;  %v910_v7 = vld [vmem:[%s1234_s1 + $0xb0] sm:$0xff]   ;;  %v914_v11 = vld [vmem:[%s1234_s1 + $0xa8] sm:$0xff]  }
   0x5   :  { %820 = vmatpush3.bf16.msra.mxu1 %v906_v3  ;;  %v915_v12 = vld [vmem:[%s1234_s1 + $0x60] sm:$0xff]   ;;  %v919_v16 = vld [vmem:[%s1234_s1 + $0x58] sm:$0xff]   ;;  %v923_v20 = vld [vmem:[%s1234_s1 + $0x50] sm:$0xff]  }
   0x6   :  { %821 = vmatprep.subr.bf16.mxu1 %v909_v6  ;;  %v916_v13 = vld [vmem:[%s1234_s1 + $0x20] sm:$0xff]   ;;  %v920_v17 = vld [vmem:[%s1234_s1 + $0x18] sm:$0xff]   ;;  %v924_v21 = vld [vmem:[%s1234_s1 + $0x10] sm:$0xff]  }
   0x7   :  { %800 = vmatpush3.bf16.msra.mxu0 %v908_v5  ;;  %v917_v14 = vld [vmem:[%s1234_s1 + $0xe0] sm:$0xff]   ;;  %v921_v18 = vld [vmem:[%s1234_s1 + $0xd8] sm:$0xff]   ;;  %v925_v22 = vld [vmem:[%s1234_s1 + $0xd0] sm:$0xff]  }
   0x8   :  { %801 = vmatprep.subr.bf16.mxu0 %v911_v8  ;;  %v918_v15 = vld [vmem:[%s1234_s1 + $0xa0] sm:$0xff]   ;;  %v922_v19 = vld [vmem:[%s1234_s1 + $0x98] sm:$0xff]   ;;  %v926_v23 = vld [vmem:[%s1234_s1 + $0x90] sm:$0xff]  }
   0x9   :  { %822 = vmatpush3.bf16.msra.mxu1 %v910_v7  ;;  %v927_v24 = vld [vmem:[%s1234_s1 + $0x48] sm:$0xff]   ;;  %v931_v28 = vld [vmem:[%s1234_s1 + $0x40] sm:$0xff]   ;;  %v935_v36 = vld [vmem:[%s1234_s1 + $0x178] sm:$0xff]  }
   0xa   :  { %823 = vmatprep.subr.bf16.mxu1 %v913_v10  ;;  %v928_v25 = vld [vmem:[%s1234_s1 + $0x8] sm:$0xff]   ;;  %v932_v29 = vld [vmem:[%s1234_s1] sm:$0xff]   ;;  %v25_v37 = vld [vmem:[%s1233_s0 + $0x18] sm:$0xff] }
   0xb   :  { %802 = vmatpush3.bf16.msra.mxu0 %v912_v9  ;;  %v929_v26 = vld [vmem:[%s1234_s1 + $0xc8] sm:$0xff]   ;;  %v933_v30 = vld [vmem:[%s1234_s1 + $0xc0] sm:$0xff]   ;;  %v32_v38 = vpack.c.bf16 %v25_v37, %v25_v37  ;;  %v936_v39 = vld [vmem:[%s1234_s1 + $0x138] sm:$0xff]  }
   0xc   :  { %803 = vmatprep.subr.bf16.mxu0 %v915_v12  ;;  %v930_v27 = vld [vmem:[%s1234_s1 + $0x88] sm:$0xff]   ;;  %v934_v33 = vld [vmem:[%s1234_s1 + $0x80] sm:$0xff]   ;;  %v24_v40 = vld [vmem:[%s1233_s0 + $0x10] sm:$0xff] }
   0xd   :  { %824 = vmatpush3.bf16.msra.mxu1 %v914_v11  ;;  %v23_v31 = vld [vmem:[%s1233_s0 + $0x8] sm:$0xff]  ;;  %v22_v34 = vld [vmem:[%s1233_s0] sm:$0xff]  ;;  %511 = vmatprep.mubr.bf16.mxu1 %v32_v38  ;;  %v31_v41 = vpack.c.bf16 %v24_v40, %v24_v40  ;;  %v937_v42 = vld [vmem:[%s1234_s1 + $0x170] sm:$0xff]  }
   0xe   :  { %825 = vmatprep.subr.bf16.mxu1 %v917_v14  ;;  %v30_v32 = vpack.c.bf16 %v23_v31, %v23_v31  ;;  %v29_v35 = vpack.c.bf16 %v22_v34, %v22_v34  ;;  %v938_v43 = vld [vmem:[%s1234_s1 + $0x130] sm:$0xff]   ;;  %v939_v45 = vld [vmem:[%s1234_s1 + $0x168] sm:$0xff]   ;;  %v941_v47 = vld [vmem:[%s1234_s1 + $0x160] sm:$0xff]  }
   0xf   :  { %804 = vmatpush3.bf16.msra.mxu0 %v916_v13  ;;  %v940_v46 = vld [vmem:[%s1234_s1 + $0x128] sm:$0xff]   ;;  %v942_v48 = vld [vmem:[%s1234_s1 + $0x120] sm:$0xff]   ;;  %v943_v49 = vld [vmem:[%s1234_s1 + $0x158] sm:$0xff]  }
  0x10   :  { %805 = vmatprep.subr.bf16.mxu0 %v919_v16  ;;  %471 = vmatprep.mubr.bf16.mxu0 %v30_v32  ;;  %v944_v50 = vld [vmem:[%s1234_s1 + $0x118] sm:$0xff]   ;;  %v945_v51 = vld [vmem:[%s1234_s1 + $0x150] sm:$0xff]   ;;  %v951_v53 = vld [vmem:[%s1234_s1 + $0x180] sm:$0xff]  }
  0x11   :  { %826 = vmatpush3.bf16.msra.mxu1 %v918_v15  ;;  %v946_v52 = vld [vmem:[%s1234_s1 + $0x110] sm:$0xff]   ;;  %v27_v54 = vld [vmem:[%s1233_s0 + $0x28] sm:$0xff] }
  0x12   :  { %827 = vmatprep.subr.bf16.mxu1 %v921_v18  ;;  %v947_v55 = vld [vmem:[%s1234_s1 + $0x148] sm:$0xff]   ;;  %v34_v56 = vpack.c.bf16 %v27_v54, %v27_v54  ;;  %v28_v57 = vld [vmem:[%s1233_s0 + $0x30] sm:$0xff] }
  0x13   :  { %806 = vmatpush3.bf16.msra.mxu0 %v920_v17  ;;  %v35_v58 = vpack.c.bf16 %v28_v57, %v28_v57  ;;  %v948_v59 = vld [vmem:[%s1234_s1 + $0x108] sm:$0xff]  }
  0x14   :  { %807 = vmatprep.subr.bf16.mxu0 %v923_v20 }
  0x15   :  { %828 = vmatpush3.bf16.msra.mxu1 %v922_v19 }
  0x16   :  { %829 = vmatprep.subr.bf16.mxu1 %v925_v22 }
  0x17   :  { %808 = vmatpush3.bf16.msra.mxu0 %v924_v21 }
  0x18   :  { %809 = vmatprep.subr.bf16.mxu0 %v927_v24 }
  0x19   :  { %830 = vmatpush3.bf16.msra.mxu1 %v926_v23 }
  0x1a   :  { %831 = vmatprep.subr.bf16.mxu1 %v929_v26 }
  0x1b   :  { %810 = vmatpush3.bf16.msra.mxu0 %v928_v25 }
  0x1c   :  { %811 = vmatprep.subr.bf16.mxu0 %v931_v28 }
  0x1d   :  { %832 = vmatpush3.bf16.msra.mxu1 %v930_v27 }
  0x1e   :  { %833 = vmatprep.subr.bf16.mxu1 %v933_v30 }
  0x1f   :  { %812 = vmatpush3.bf16.msra.mxu0 %v932_v29 }
  0x20   :  { %841 = vmatprep.subr.bf16.mxu0 %v935_v36 }
  0x21   :  { %834 = vmatpush3.bf16.msra.mxu1 %v934_v33 }
  0x22   :  { %472 = vmatmul.mubr.bf16.vlgmr.msra.gmra.mxu0 %v29_v35  ;;  %874 = vmatprep.subr.bf16.mxu1 %v986_v44 }
  0x23   :  { %842 = vmatpush3.bf16.msra.mxu0 %v936_v39  ;;  %551 = vmatprep.mubr.bf16.mxu0 %v34_v56 }
  0x24   :  { %512 = vmatmul.mubr.bf16.vlgmr.msra.gmra.mxu1 %v31_v41  ;;  %843 = vmatprep.subr.bf16.mxu0 %v937_v42 }
  0x25   :  { %876 = vmatprep.mubr.msk.bf16.mxu1 %vm987_vm0, %v986_v44  ;;  %875 = vmatpush3.bf16.msra.mxu1 %v951_v53 }
  0x26   :  { %880 = vmatprep.subr.bf16.mxu1 %v986_v44 }
  0x27   :  { %844 = vmatpush3.bf16.msra.mxu0 %v938_v43 }
  0x28   :  { %845 = vmatprep.subr.bf16.mxu0 %v939_v45 }
  0x2b   :  { %846 = vmatpush3.bf16.msra.mxu0 %v940_v46 }
  0x2c   :  { %847 = vmatprep.subr.bf16.mxu0 %v941_v47  ;;  %877 = vmatmul.mubr.msk.bf16.vlgmr.msra.gmra.mxu1 %vm435_vm1, %v35_v58 }
  0x2d   :  { %896 = vmatprep.mubr.msk.bf16.mxu1 %vm987_vm0, %v986_v44 }
  0x2f   :  { %848 = vmatpush3.bf16.msra.mxu0 %v942_v48 }
  0x30   :  { %849 = vmatprep.subr.bf16.mxu0 %v943_v49 }
  0x33   :  { %850 = vmatpush3.bf16.msra.mxu0 %v944_v50 }
  0x34   :  { %851 = vmatprep.subr.bf16.mxu0 %v945_v51 }
  0x37   :  { %852 = vmatpush3.bf16.msra.mxu0 %v946_v52 }
  0x38   :  { %10 = vsyncpa [#allocation3], 0  ;;  %853 = vmatprep.subr.bf16.mxu0 %v947_v55  ;;  %v949_v60 = vld [vmem:[%s1234_s1 + $0x140] sm:$0xff]   ;;  %v952_v0 = vld [vmem:[%s1236_s3 + $0x38] sm:$0xff]  }
  0x39   :  { %v950_v61 = vld [vmem:[%s1234_s1 + $0x100] sm:$0xff]   ;;  %881 = vmatpush3.bf16.msra.mxu1 %v952_v0  ;;  %v953_v1 = vld [vmem:[%s1236_s3 + $0x30] sm:$0xff]   ;;  %v954_v2 = vld [vmem:[%s1236_s3 + $0x28] sm:$0xff]  }
  0x3a   :  { %v26_v62 = vld [vmem:[%s1233_s0 + $0x20] sm:$0xff]  ;;  %882 = vmatprep.subr.bf16.mxu1 %v986_v44  ;;  %v956_v4 = vld [vmem:[%s1236_s3 + $0x18] sm:$0xff]   ;;  %v957_v5 = vld [vmem:[%s1236_s3 + $0x10] sm:$0xff]  }
  0x3b   :  { %854 = vmatpush3.bf16.msra.mxu0 %v948_v59  ;;  %v33_v63 = vpack.c.bf16 %v26_v62, %v26_v62  ;;  %v955_v3 = vld [vmem:[%s1236_s3 + $0x20] sm:$0xff]   ;;  %v958_v6 = vld [vmem:[%s1236_s3 + $0x8] sm:$0xff]  }
  0x3c   :  { %855 = vmatprep.subr.bf16.mxu0 %v949_v60  ;;  %v959_v7 = vld [vmem:[%s1236_s3] sm:$0xff]  }
  0x3d   :  { %883 = vmatpush3.bf16.msra.mxu1 %v953_v1  ;;  %v737_v21 = vld [vmem:[%s1235_s2] ss:$0 sm:$0xff]  ;;  %s988_s2 = smov [#allocation2]  }
  0x3e   :  { %884 = vmatprep.subr.bf16.mxu1 %v986_v44  ;;  %v788_v34 = vld [vmem:[%s1237_s4] ss:$0 sm:$0xff]  ;;  %s729_s22 = sshll.u32 %s988_s2, 4  ;;  %s730_s22 = int_to_ptr.vmem [resolvable:$true] %s729_s22 }
  0x3f   :  { %856 = vmatpush3.bf16.msra.mxu0 %v950_v61  ;;  %s964_s4 = scalar_lea.vmem %s730_s22, 128  ;;  %p969_p1 = scmp.lt.s32.totalorder %s730_s22, %s730_s22 }
  0x40   :  { %p965_p0 = scmp.ne.s32.totalorder %s730_s22, %s964_s4  ;;  %p970_p2 = scmp.lt.s32.totalorder %s964_s4, %s964_s4 }
  0x41   :  { %885 = vmatpush3.bf16.msra.mxu1 %v954_v2 }
  0x42   :  { %552 = vmatmul.mubr.bf16.vlgmr.msra.gmra.mxu0 %v33_v63  ;;  %886 = vmatprep.subr.bf16.mxu1 %v986_v44  ;;  %p971_p3 = por %p970_p2, %p969_p1 }
  0x44   :  { %p972_p4 = pnand %p971_p3, %p965_p0 }
  0x45   :  { %887 = vmatpush3.bf16.msra.mxu1 %v955_v3 }
  0x46   :  { %888 = vmatprep.subr.bf16.mxu1 %v986_v44 }
  0x49   :  { %889 = vmatpush3.bf16.msra.mxu1 %v956_v4 }
  0x4a   :  { %890 = vmatprep.subr.bf16.mxu1 %v986_v44 }
  0x4d   :  { %891 = vmatpush3.bf16.msra.mxu1 %v957_v5 }
  0x4e   :  { %892 = vmatprep.subr.bf16.mxu1 %v986_v44 }
  0x51   :  { %893 = vmatpush3.bf16.msra.mxu1 %v958_v6 }
  0x52   :  { %894 = vmatprep.subr.bf16.mxu1 %v986_v44 }
  0x55   :  { %895 = vmatpush3.bf16.msra.mxu1 %v959_v7 }
  0xe2   :  { %v813_v8 = vpop.f32.mrf.mxu0 }
  0xe4   :  { %v814_v9 = vpop.f32.mrf.mxu0  ;;  %v835_v10 = vpop.f32.mrf.mxu1 }
  0xe5   :  { %v815_v20 = vadd.f32 %v814_v9, %v813_v8 }
  0xe6   :  { %v816_v11 = vpop.f32.mrf.mxu0  ;;  %v836_v12 = vpop.f32.mrf.mxu1 }
  0xe7   :  { %v474_v22 = vadd.f32 %v815_v20, %v737_v21  ;;  %v837_v23 = vadd.f32 %v836_v12, %v835_v10 }
  0xe8   :  { %v817_v13 = vpop.f32.mrf.mxu0  ;;  %v838_v14 = vpop.f32.mrf.mxu1 }
  0xe9   :  { %v514_v26 = vadd.f32 %v837_v23, %v474_v22 }
  0xea   :  { %v839_v15 = vpop.f32.mrf.mxu1 }
  0xec   :  { %v593_v16 = vpop.f32.mrf.mxu1 }
  0xee   :  { %v878_v17 = vpop.f32.mrf.mxu1 }
  0xf0   :  { %v596_v18 = vpop.f32.mrf.mxu1 }
  0xf2   :  { %v879_v19 = vpop.f32.mrf.mxu1 }
 0x102   :  { %v857_v24 = vpop.f32.mrf.mxu0 }
 0x104   :  { %v858_v25 = vpop.f32.mrf.mxu0 }
 0x105   :  { %v859_v27 = vadd.f32 %v858_v25, %v857_v24 }
 0x106   :  { %v860_v28 = vpop.f32.mrf.mxu0 }
 0x107   :  { %v554_v29 = vadd.f32 %v859_v27, %v514_v26 }
 0x108   :  { %v861_v30 = vpop.f32.mrf.mxu0 }
 0x109   :  { %v594_v31 = vadd.f32 %v593_v16, %v554_v29 }
 0x10b   :  { %v599_v32 = vmax.f32 %v594_v31, 0.0 }
 0x10d   :  { %v600_v33 = vpack.c.bf16 %v599_v32, %v599_v32 }
 0x10f   :  { %897 = vmatmul.mubr.bf16.vlgmr.msra.gmra.mxu1 %v600_v33 }
 0x1cf   :  { %v706_v35 = vpop.f32.mrf.mxu1 }
 0x1d0   :  { %v707_v36 = vadd.f32 %v788_v34, %v706_v35 }
 0x1d1   :  { %v898_v37 = vpop.f32.mrf.mxu1 }
 0x1d2   :  { %712 = vmax.xlane.f32.xlu0 %v707_v36 }
 0x1d3   :  { %v709_v38 = vpop.f32.mrf.mxu1 }
 0x1d5   :  { %v899_v39 = vpop.f32.mrf.mxu1 }
 0x25b   :  { %v713_v40 = vpop.xlane.xlu0 %712 }
 0x25c   :  { %v714_v41 = vsub.f32 %v707_v36, %v713_v40 }
 0x25e   :  { %v715_v42 = vmul.f32 1.442695, %v714_v41 }
 0x260   :  { %960 = vpow2.f32 %v715_v42 }
 0x26d   :  { %v961_v43 = vpop.eup %960 }
 0x26e   :  { %717 = vadd.xlane.f32.xlu0 %v961_v43 }
 0x2f7   :  { %v718_v44 = vpop.xlane.xlu0 %717 }
 0x2f8   :  { %962 = vlog2.f32 %v718_v44 }
 0x305   :  { %v963_v45 = vpop.eup %962 }
 0x306   :  { %v720_v46 = vmul.f32 0.6931472, %v963_v45 }
 0x308   :  { %v721_v47 = vsub.f32 %v714_v41, %v720_v46 }
 0x30a   :  { %722 = vst [vmem:[#allocation2] sm:$0xff] %v721_v47 }
 0x30b   :  { %975 = shalt.err (!%p972_p4)
}
 0x30c   :  { %732 = dma.vmem_to_hbm [thread:$0]  %s730_s22, 128, %s1238_s5, [#allocation3]  }
 0x30d   :  { %984 = dma.done.wait [#allocation3], 128  }
 0x30e   :  { %985 = vsyncadd [#allocation3], 4294967168 }
 0x30f   :  { %736 = vsyncpa [#allocation3], 1 }

</bundles_post_ra>
